<compile_context>
chip_gen: v5e
topology: v5e:2x2
jax: 0.10.0
libtpu: 0.0.40
codegen_flags: <defaults>
</compile_context>

<pallas_src>
import functools

import jax
import jax.numpy as jnp
from jax.experimental import pallas as pl
from jax.experimental.pallas import tpu as pltpu


def _modelb_batched_kernel(x_ref, y_ref, o_ref):
    """Fused relu + duplicate-cat for a lane-chunk of problems.

    x_ref, y_ref : (B*C*L, PL)  inputs, pre-permuted to (c, b, l)-major rows
                   (the interleave), problems on lanes.
    o_ref        : (2*B*2C*L, PL) outputs; row q = flattened (row-major)
                   (2B, 2C*L) ModelB output of each problem, problems on lanes.

    Because the wrapper already presents the rows in interleaved order, the
    kernel is just: relu (VPU) -> one aligned sublane concat -> two aligned,
    full-lane (unmasked) stores for the (z3, z3) duplication.
    """
    half = jnp.concatenate(
        [jnp.maximum(x_ref[...], 0.0),      # relu, scalar broadcast on the VPU
         jnp.maximum(y_ref[...], 0.0)],
        axis=0)                             # (B*2C*L, PL); 24-row pieces -> 8-aligned
    n = half.shape[0]
    o_ref[0:n, :] = half                    # rows [0, B*F)      -> z3
    o_ref[n:2 * n, :] = half                # rows [B*F, 2*B*F)  -> the duplicate z3


def _round_up(a, b):
    return pl.cdiv(a, b) * b


@functools.partial(jax.jit, static_argnames=("lanes_per_step",))
def model_b_forward_batched(xs, ys, *, lanes_per_step=512):
    """xs, ys: (N, B, C, L).  Returns (N, 1, 2*B, 2*C*L) == vmap of ModelB."""
    N, B, C, L = xs.shape
    F = 2 * C * L               # per-row output features of one problem
    R = B * C * L               # sublane rows contributed by each of x / y
    out_rows = 2 * B * F        # = 4 * R

    # Layout plumbing (outside the kernel, per the review: acceptable for a
    # lane-dense slab).  Put the per-problem element index on sublanes and the
    # problem index on lanes.  Choosing axis order (2, 1, 3, 0) ((c, b, l)-major)
    # makes this transpose ALSO perform the module's cat->permute->reshape
    # interleave, so no in-kernel permutation is needed at all.
    x_t = jnp.transpose(xs, (2, 1, 3, 0)).reshape(R, N)
    y_t = jnp.transpose(ys, (2, 1, 3, 0)).reshape(R, N)

    if N < lanes_per_step:
        pl_lanes, Np = N, N                          # one step; full-extent block
    elif N % lanes_per_step == 0:
        pl_lanes, Np = lanes_per_step, N
    else:
        pl_lanes = lanes_per_step
        Np = _round_up(N, lanes_per_step)            # pad problems up to a full step
        x_t = jnp.pad(x_t, ((0, 0), (0, Np - N)))
        y_t = jnp.pad(y_t, ((0, 0), (0, Np - N)))

    grid = (Np // pl_lanes,)
    itemsize = jnp.dtype(xs.dtype).itemsize

    out_t = pl.pallas_call(
        _modelb_batched_kernel,
        out_shape=jax.ShapeDtypeStruct((out_rows, Np), xs.dtype),
        grid=grid,
        # Sublane dims (24 / 96) are multiples of 8; lane dim is either 512
        # (multiple of 128) or the full array extent -> (8,128) rule satisfied.
        in_specs=[pl.BlockSpec((R, pl_lanes), lambda i: (0, i)),
                  pl.BlockSpec((R, pl_lanes), lambda i: (0, i))],
        out_specs=pl.BlockSpec((out_rows, pl_lanes), lambda i: (0, i)),
        compiler_params=pltpu.CompilerParams(
            dimension_semantics=("parallel",)),       # v7x: split grid across 2 TCs
        cost_estimate=pl.CostEstimate(
            flops=2 * R * Np,                         # relu compares over x and y
            transcendentals=0,
            bytes_accessed=(2 * R + out_rows) * Np * itemsize),
    )(x_t, y_t)

    # Back to the module's (N, 1, 2B, F) layout (plumbing only).
    out_t = out_t[:, :N]
    out = jnp.transpose(out_t.reshape(2 * B, F, N), (2, 0, 1))   # (N, 2B, F)
    return out.reshape(N, 1, 2 * B, F)


@jax.jit
def model_b_forward(x, y):
    """x, y: (B, C, L).  Returns (1, 2*B, 2*C*L), matching ModelB.forward.

    Single-instance path = batched path with N=1.  At this size the runtime is
    dominated by the pallas_call boundary itself (as noted in the review); the
    batched entry point above is the one to use when ModelB is invoked more
    than once per step.
    """
    return model_b_forward_batched(x[None], y[None])[0]


def _reference(x, y):
    # Pure-JAX mirror of the PyTorch module.
    z0 = jnp.concatenate([x, y], axis=1)
    z1 = jnp.transpose(z0, (1, 0, 2)).reshape(z0.shape[0], -1)
    z2 = jnp.maximum(z1, 0.0)
    z3 = jnp.transpose(z2.reshape(z2.shape[0], 1, z2.shape[1]), (1, 0, 2))
    return jnp.concatenate([z3, z3], axis=1)


if __name__ == "__main__":
    key = jax.random.PRNGKey(0)
    kx, ky, kbx, kby = jax.random.split(key, 4)

    # --- single instance, exactly the PyTorch spec shapes (2, 3, 4) ---
    x = jax.random.normal(kx, (2, 3, 4), dtype=jnp.float32)
    y = jax.random.normal(ky, (2, 3, 4), dtype=jnp.float32)
    out = jax.block_until_ready(model_b_forward(x, y))
    ref = _reference(x, y)
    assert out.shape == (1, 4, 24), out.shape
    assert jnp.allclose(out, ref, atol=1e-6), "single-instance mismatch"

    # --- batched: N ModelB invocations fused into one pallas_call (grid of 4) ---
    N = 2048
    xs = jax.random.normal(kbx, (N, 2, 3, 4), dtype=jnp.float32)
    ys = jax.random.normal(kby, (N, 2, 3, 4), dtype=jnp.float32)
    out_b = jax.block_until_ready(model_b_forward_batched(xs, ys))
    ref_b = jax.vmap(_reference)(xs, ys)
    assert out_b.shape == (N, 1, 4, 24), out_b.shape
    assert jnp.allclose(out_b, ref_b, atol=1e-6), "batched mismatch"

    # --- exercise the small-N (single full-extent step) and padded-N paths ---
    out_s = jax.block_until_ready(model_b_forward_batched(xs[:100], ys[:100]))
    assert jnp.allclose(out_s, ref_b[:100], atol=1e-6), "small-N mismatch"
    out_p = jax.block_until_ready(model_b_forward_batched(xs[:600], ys[:600]))
    assert jnp.allclose(out_p, ref_b[:600], atol=1e-6), "padded-N mismatch"

    print("KERNEL_OK")
</pallas_src>

<mosaic_0001>
module attributes {stable_mosaic.version = 11 : i64} {
  func.func @_modelb_batched_kernel(%arg0: i32, %arg1: memref<24x1xf32, #tpu.memory_space<vmem>>, %arg2: memref<24x1xf32, #tpu.memory_space<vmem>>, %arg3: memref<96x1xf32, #tpu.memory_space<vmem>>) attributes {dimension_semantics = [#tpu.dimension_semantics<parallel>], iteration_bounds = array<i64: 1>, scalar_prefetch = 0 : i64, scratch_operands = 0 : i64, tpu.core_type = #tpu.core_type<tc>, window_params = [{transform_indices = @transform_0, window_bounds = array<i64: 24, 1>}, {transform_indices = @transform_1, window_bounds = array<i64: 24, 1>}, {transform_indices = @transform_2, window_bounds = array<i64: 96, 1>}]} {
    %c0 = arith.constant 0 : index
    %c0_0 = arith.constant 0 : index
    %0 = vector.load %arg1[%c0, %c0_0] : memref<24x1xf32, #tpu.memory_space<vmem>>, vector<24x1xf32>
    %cst = arith.constant 0.000000e+00 : f32
    %1 = vector.broadcast %cst : f32 to vector<24x1xf32>
    %2 = arith.maximumf %0, %1 : vector<24x1xf32>
    %c0_1 = arith.constant 0 : index
    %c0_2 = arith.constant 0 : index
    %3 = vector.load %arg2[%c0_1, %c0_2] : memref<24x1xf32, #tpu.memory_space<vmem>>, vector<24x1xf32>
    %cst_3 = arith.constant 0.000000e+00 : f32
    %4 = vector.broadcast %cst_3 : f32 to vector<24x1xf32>
    %5 = arith.maximumf %3, %4 : vector<24x1xf32>
    %6 = tpu.concatenate %2, %5 in 0 : vector<24x1xf32>, vector<24x1xf32> -> vector<48x1xf32>
    %c0_4 = arith.constant 0 : index
    %c0_5 = arith.constant 0 : index
    %7 = vector.load %arg3[%c0_4, %c0_5] : memref<96x1xf32, #tpu.memory_space<vmem>>, vector<48x1xf32>
    tpu.vector_store %arg3[%c0_4, %c0_5], %6 {strides = array<i32>} : memref<96x1xf32, #tpu.memory_space<vmem>>, vector<48x1xf32>,
    %c48 = arith.constant 48 : index
    %c0_6 = arith.constant 0 : index
    %8 = vector.load %arg3[%c48, %c0_6] : memref<96x1xf32, #tpu.memory_space<vmem>>, vector<48x1xf32>
    tpu.vector_store %arg3[%c48, %c0_6], %6 {strides = array<i32>} : memref<96x1xf32, #tpu.memory_space<vmem>>, vector<48x1xf32>,
    return
  }
  func.func @transform_0(%arg0: i32) -> (i32, i32) {
    %c0_i32 = arith.constant 0 : i32
    %c0_i32_0 = arith.constant 0 : i32
    return %c0_i32, %arg0 : i32, i32
  }
  func.func @transform_1(%arg0: i32) -> (i32, i32) {
    %c0_i32 = arith.constant 0 : i32
    %c0_i32_0 = arith.constant 0 : i32
    return %c0_i32, %arg0 : i32, i32
  }
  func.func @transform_2(%arg0: i32) -> (i32, i32) {
    %c0_i32 = arith.constant 0 : i32
    %c0_i32_0 = arith.constant 0 : i32
    return %c0_i32, %arg0 : i32, i32
  }
}

</mosaic_0001>

<bundles_post_ra>
// kernel: model_b_forward_batched.1
= control target key start
LH: loop header
LB: loop body
LE: loop exit
PB: predicated region body
PF: predicated region fallthrough
CT: control target
= control target key end

     0   :  { %vm23_vm0 = vcmask 7168   ;;  %s121_s0 = inlined_call_operand.vmem [shape: f32[24,1], index: 0, kind: input, shape index: {}]   ;;  %s122_s1 = inlined_call_operand.vmem [shape: f32[24,1], index: 1, kind: input, shape index: {}]   ;;  %s123_s2 = inlined_call_operand.vmem [shape: f32[96,1], index: 2, kind: output, shape index: {}]  }
   0x1   :  { %v11_v0 = vld [vmem:[%s121_s0] sm:$0xff]  ;;  %v12_v1 = vld [vmem:[%s121_s0 + $0x8] sm:$0xff]  ;;  %v13_v2 = vld [vmem:[%s121_s0 + $0x10] sm:$0xff] }
   0x2   :  { %v14_v3 = vmax.f32 %v11_v0, 0.0  ;;  %v15_v4 = vmax.f32 %v12_v1, 0.0  ;;  %v17_v5 = vld [vmem:[%s122_s1] sm:$0xff]  ;;  %v16_v6 = vmax.f32 %v13_v2, 0.0  ;;  %v18_v7 = vld [vmem:[%s122_s1 + $0x8] sm:$0xff]  ;;  %v19_v9 = vld [vmem:[%s122_s1 + $0x10] sm:$0xff] }
   0x3   :  { %v20_v8 = vmax.f32 %v17_v5, 0.0  ;;  %v21_v10 = vmax.f32 %v18_v7, 0.0  ;;  %v22_v11 = vmax.f32 %v19_v9, 0.0 }
   0x4   :  { %24 = vst.msk [vmem:[%s123_s2] sm:$0xff] %vm23_vm0, %v14_v3 }
   0x5   :  { %30 = vst.msk [vmem:[%s123_s2 + $0x30] sm:$0xff] %vm23_vm0, %v14_v3 }
   0x6   :  { %25 = vst.msk [vmem:[%s123_s2 + $0x8] sm:$0xff] %vm23_vm0, %v15_v4 }
   0x7   :  { %31 = vst.msk [vmem:[%s123_s2 + $0x38] sm:$0xff] %vm23_vm0, %v15_v4 }
   0x8   :  { %26 = vst.msk [vmem:[%s123_s2 + $0x10] sm:$0xff] %vm23_vm0, %v16_v6 }
   0x9   :  { %32 = vst.msk [vmem:[%s123_s2 + $0x40] sm:$0xff] %vm23_vm0, %v16_v6 }
   0xa   :  { %27 = vst.msk [vmem:[%s123_s2 + $0x18] sm:$0xff] %vm23_vm0, %v20_v8 }
   0xb   :  { %33 = vst.msk [vmem:[%s123_s2 + $0x48] sm:$0xff] %vm23_vm0, %v20_v8 }
   0xc   :  { %28 = vst.msk [vmem:[%s123_s2 + $0x20] sm:$0xff] %vm23_vm0, %v21_v10 }
   0xd   :  { %34 = vst.msk [vmem:[%s123_s2 + $0x50] sm:$0xff] %vm23_vm0, %v21_v10 }
   0xe   :  { %29 = vst.msk [vmem:[%s123_s2 + $0x28] sm:$0xff] %vm23_vm0, %v22_v11 }
   0xf   :  { %35 = vst.msk [vmem:[%s123_s2 + $0x58] sm:$0xff] %vm23_vm0, %v22_v11 }

</bundles_post_ra>
